<compile_context>
chip_gen: v6e
topology: v6e:2x2x1
jax: 0.10.0
libtpu: 0.0.40
codegen_flags: <defaults>
</compile_context>

<pallas_src>
import functools

import jax
import jax.numpy as jnp
from jax import lax
from jax.experimental import pallas as pl
from jax.experimental.pallas import tpu as pltpu


_NEG_BIG = -1e30  # finite "-inf" so online softmax never produces NaN


def _vmem_limit_bytes():
    # 64 MiB is comfortable on v5e/v6e (128 MiB physical); on v7x (64 MiB physical
    # per TC) leave headroom for compiler scratch / pipelining.
    try:
        cap = int(pltpu.get_tpu_info().vmem_capacity_bytes)
        if cap > 0:
            return min(64 * 1024 * 1024, cap * 3 // 4)
    except Exception:
        pass
    return 64 * 1024 * 1024


_VMEM_LIMIT = _vmem_limit_bytes()


def _round_up(v, m):
    return (v + m - 1) // m * m


# ----------------------------- tiled linear (y = x @ W.T) --------------------------

def _matmul_kernel(x_ref, w_ref, o_ref, acc_ref, *, n_k):
    k = pl.program_id(2)

    @pl.when(k == 0)
    def _():
        acc_ref[...] = jnp.zeros_like(acc_ref)

    acc_ref[...] += lax.dot_general(
        x_ref[...].astype(jnp.bfloat16), w_ref[...].astype(jnp.bfloat16),
        dimension_numbers=(((1,), (1,)), ((), ())),
        preferred_element_type=jnp.float32)

    @pl.when(k == n_k - 1)
    def _():
        o_ref[...] = acc_ref[...].astype(o_ref.dtype)


def pallas_linear(x, w, out_dtype=jnp.bfloat16, tile_m=512, tile_n=512, tile_k=512):
    """F.linear: y = x @ W.T (bias is None for every MLA linear)."""
    M, K = x.shape
    N, K2 = w.shape
    assert K == K2

    tm = min(tile_m, _round_up(M, 8))
    Mp = _round_up(M, tm)
    if Mp != M:
        x = jnp.pad(x, ((0, Mp - M), (0, 0)))
    tn = tile_n if N % tile_n == 0 else N
    tk = tile_k if K % tile_k == 0 else K
    n_m, n_n, n_k = Mp // tm, N // tn, K // tk

    out = pl.pallas_call(
        functools.partial(_matmul_kernel, n_k=n_k),
        out_shape=jax.ShapeDtypeStruct((Mp, N), out_dtype),
        grid=(n_m, n_n, n_k),
        in_specs=[pl.BlockSpec((tm, tk), lambda i, j, k: (i, k)),
                  pl.BlockSpec((tn, tk), lambda i, j, k: (j, k))],
        out_specs=pl.BlockSpec((tm, tn), lambda i, j, k: (i, j)),
        scratch_shapes=[pltpu.VMEM((tm, tn), jnp.float32)],
        compiler_params=pltpu.CompilerParams(
            dimension_semantics=("parallel", "parallel", "arbitrary"),
            vmem_limit_bytes=_VMEM_LIMIT),
    )(x, w)
    return out[:M] if Mp != M else out


# --------------------- RMSNorm-fused linear (q_norm -> wq_b) ------------------------
# K (the norm axis) is untiled; the normalized x tile is cached in a bf16 VMEM scratch
# at j == 0 and reused for every output-column tile j > 0 of the same row block.

def _rms_linear_kernel(x_ref, g_ref, w_ref, o_ref, xn_ref, *, eps):
    j = pl.program_id(1)

    @pl.when(j == 0)
    def _():
        xf = x_ref[...].astype(jnp.float32)
        var = jnp.mean(xf * xf, axis=-1, keepdims=True)
        xn = xf * lax.rsqrt(var + eps) * g_ref[...].astype(jnp.float32)
        xn_ref[...] = xn.astype(jnp.bfloat16)

    o_ref[...] = lax.dot_general(
        xn_ref[...], w_ref[...].astype(jnp.bfloat16),
        dimension_numbers=(((1,), (1,)), ((), ())),
        preferred_element_type=jnp.float32).astype(o_ref.dtype)


def pallas_rms_linear(x, rms_weight, w, eps=1e-6, out_dtype=jnp.bfloat16,
                      tile_m=256, tile_n=512):
    M, K = x.shape
    N, K2 = w.shape
    assert K == K2

    tm = min(tile_m, _round_up(M, 8))
    Mp = _round_up(M, tm)
    if Mp != M:
        x = jnp.pad(x, ((0, Mp - M), (0, 0)))
    tn = tile_n if N % tile_n == 0 else N
    n_m, n_n = Mp // tm, N // tn

    out = pl.pallas_call(
        functools.partial(_rms_linear_kernel, eps=eps),
        out_shape=jax.ShapeDtypeStruct((Mp, N), out_dtype),
        grid=(n_m, n_n),
        in_specs=[pl.BlockSpec((tm, K), lambda i, j: (i, 0)),
                  pl.BlockSpec((1, K), lambda i, j: (0, 0)),
                  pl.BlockSpec((tn, K), lambda i, j: (j, 0))],
        out_specs=pl.BlockSpec((tm, tn), lambda i, j: (i, j)),
        scratch_shapes=[pltpu.VMEM((tm, K), jnp.bfloat16)],
        compiler_params=pltpu.CompilerParams(
            # j must stay sequential ("arbitrary") so the normalized-x cache written
            # at j == 0 is valid for all later j of the same i under megacore.
            dimension_semantics=("parallel", "arbitrary"),
            vmem_limit_bytes=_VMEM_LIMIT),
    )(x, rms_weight.reshape(1, K).astype(jnp.float32), w)
    return out[:M] if Mp != M else out


# ----------------------------- standalone RMSNorm (kv_norm) -------------------------

def _rmsnorm_kernel(x_ref, g_ref, o_ref, *, eps):
    xf = x_ref[...].astype(jnp.float32)
    var = jnp.mean(xf * xf, axis=-1, keepdims=True)
    o_ref[...] = (xf * lax.rsqrt(var + eps)
                  * g_ref[...].astype(jnp.float32)).astype(o_ref.dtype)


def pallas_rmsnorm(x, g, eps=1e-6, out_dtype=jnp.bfloat16, tile_m=512):
    M, K = x.shape
    tm = min(tile_m, _round_up(M, 8))
    Mp = _round_up(M, tm)
    if Mp != M:
        x = jnp.pad(x, ((0, Mp - M), (0, 0)))
    out = pl.pallas_call(
        functools.partial(_rmsnorm_kernel, eps=eps),
        out_shape=jax.ShapeDtypeStruct((Mp, K), out_dtype),
        grid=(Mp // tm,),
        in_specs=[pl.BlockSpec((tm, K), lambda i: (i, 0)),
                  pl.BlockSpec((1, K), lambda i: (0, 0))],
        out_specs=pl.BlockSpec((tm, K), lambda i: (i, 0)),
        compiler_params=pltpu.CompilerParams(
            dimension_semantics=("parallel",),
            vmem_limit_bytes=_VMEM_LIMIT),
    )(x, g.reshape(1, K).astype(jnp.float32))
    return out[:M] if Mp != M else out


# --------------- flash-style absorbed MLA attention (q/v absorption fused) ----------

def _mla_flash_kernel(qn_ref, qp_ref, kv_ref, kpe_ref, wk_ref, wv_ref, o_ref,
                      qab_scr, qpe_scr, m_scr, l_scr, acc_scr, *, tq, tkv, th):
    q_i = pl.program_id(2)
    k_i = pl.program_id(3)
    n_kv = pl.num_programs(3)

    @pl.when(k_i == 0)
    def _():
        m_scr[...] = jnp.full_like(m_scr, _NEG_BIG)
        l_scr[...] = jnp.zeros_like(l_scr)
        acc_scr[...] = jnp.zeros_like(acc_scr)
        # q absorption (softmax_scale pre-folded into wk):
        #   (th, tq, Dn) @ (th, Dn, C) -> (th, tq, C), cached as bf16 for all kv blocks
        qab = lax.dot_general(
            qn_ref[0], wk_ref[...],
            dimension_numbers=(((2,), (1,)), ((0,), (0,))),
            preferred_element_type=jnp.float32)
        C = qab.shape[-1]
        qab_scr[...] = qab.reshape(th * tq, C).astype(jnp.bfloat16)
        dr = qp_ref.shape[-1]
        qpe_scr[...] = qp_ref[0].reshape(th * tq, dr).astype(jnp.bfloat16)

    # Skip kv blocks that are entirely in the causal future of this q block
    # (their DMA is also elided by the clamped kv index_map).
    @pl.when(k_i * tkv <= q_i * tq + (tq - 1))
    def _():
        kvn = kv_ref[0].astype(jnp.bfloat16)      # (tkv, C), pre-normalized
        kpe = kpe_ref[0].astype(jnp.bfloat16)     # (tkv, Dr)

        # all heads batched into full-width MXU matmuls (scale already folded in)
        s = lax.dot_general(qab_scr[...], kvn, (((1,), (1,)), ((), ())),
                            preferred_element_type=jnp.float32)
        s = s + lax.dot_general(qpe_scr[...], kpe, (((1,), (1,)), ((), ())),
                                preferred_element_type=jnp.float32)

        def update(s_eff, keep):
            m_prev = m_scr[...]
            m_new = jnp.maximum(m_prev, jnp.max(s_eff, axis=-1, keepdims=True))
            alpha = jnp.exp(m_prev - m_new)
            p = jnp.exp(s_eff - m_new)
            if keep is not None:
                p = jnp.where(keep, p, 0.0)       # guard against all-masked rows
            l_scr[...] = alpha * l_scr[...] + jnp.sum(p, axis=-1, keepdims=True)
            acc_scr[...] = alpha * acc_scr[...] + lax.dot_general(
                p.astype(jnp.bfloat16), kvn, (((1,), (0,)), ((), ())),
                preferred_element_type=jnp.float32)
            m_scr[...] = m_new

        # kv block fully visible to every row of this q block -> no mask needed
        full = k_i * tkv + (tkv - 1) <= q_i * tq

        @pl.when(full)
        def _():
            update(s, None)

        @pl.when(jnp.logical_not(full))
        def _():
            s_loc = lax.broadcasted_iota(jnp.int32, (th, tq, tkv), 1).reshape(th * tq, tkv)
            t_loc = lax.broadcasted_iota(jnp.int32, (th, tq, tkv), 2).reshape(th * tq, tkv)
            keep = (t_loc + k_i * tkv) <= (s_loc + q_i * tq)
            update(jnp.where(keep, s, _NEG_BIG), keep)

    @pl.when(k_i == n_kv - 1)
    def _():
        C = acc_scr.shape[-1]
        # exact reciprocal for validation fidelity; approx=True is fine in production
        ctx = acc_scr[...] * pl.reciprocal(l_scr[...], approx=False)
        ctx = ctx.reshape(th, tq, C).astype(jnp.bfloat16)
        # value absorption: (th, tq, C) x (th, Dv, C) -> (th, tq, Dv)
        out = lax.dot_general(
            ctx, wv_ref[...],
            dimension_numbers=(((2,), (2,)), ((0,), (0,))),
            preferred_element_type=jnp.float32)
        o_ref[0] = out.astype(o_ref.dtype)


def pallas_mla_attention(q_nope, q_pe, kvn, k_pe, wk_scaled, wv,
                         tile_h=16, tile_q=128, tile_kv=256):
    """Absorbed MLA prefill attention with fused q/value absorption.
    Inputs: q_nope (B,H,S,Dn) bf16, q_pe (B,H,S,Dr) bf16 (already scaled),
    kvn (B,T,C) bf16 (already RMS-normed), k_pe (B,T,Dr) bf16,
    wk_scaled (H,Dn,C) bf16 (softmax_scale folded in), wv (H,Dv,C) bf16.
    Returns (B,H,S,Dv) bf16."""
    B, H, S, Dn = q_nope.shape
    Dr = q_pe.shape[-1]
    T, C = kvn.shape[1], kvn.shape[2]
    Dv = wv.shape[1]

    th = H if H <= tile_h else tile_h
    tq = S if S <= tile_q else tile_q
    tkv = T if T <= tile_kv else tile_kv
    # TODO(synk): ragged S/T (non tile multiples) would need padding; prefill shapes
    #             here are tile-aligned.
    assert H % th == 0 and S % tq == 0 and T % tkv == 0

    def kv_idx(b, h, q, k):
        # Clamp to the last causally visible kv block for this q block so that
        # fully-masked future blocks are never DMA'd (repeated index -> elided).
        last_vis = (q * tq + tq - 1) // tkv
        return (b, jnp.minimum(k, last_vis), 0)

    kernel = functools.partial(_mla_flash_kernel, tq=tq, tkv=tkv, th=th)
    return pl.pallas_call(
        kernel,
        out_shape=jax.ShapeDtypeStruct((B, H, S, Dv), jnp.bfloat16),
        grid=(B, H // th, S // tq, T // tkv),
        in_specs=[
            pl.BlockSpec((1, th, tq, Dn), lambda b, h, q, k: (b, h, q, 0)),
            pl.BlockSpec((1, th, tq, Dr), lambda b, h, q, k: (b, h, q, 0)),
            pl.BlockSpec((1, tkv, C), kv_idx),
            pl.BlockSpec((1, tkv, Dr), kv_idx),
            pl.BlockSpec((th, Dn, C), lambda b, h, q, k: (h, 0, 0)),
            pl.BlockSpec((th, Dv, C), lambda b, h, q, k: (h, 0, 0)),
        ],
        out_specs=pl.BlockSpec((1, th, tq, Dv), lambda b, h, q, k: (b, h, q, 0)),
        scratch_shapes=[
            pltpu.VMEM((th * tq, C), jnp.bfloat16),    # absorbed (scaled) q
            pltpu.VMEM((th * tq, Dr), jnp.bfloat16),   # rotary (scaled) q_pe
            pltpu.VMEM((th * tq, 1), jnp.float32),     # running max
            pltpu.VMEM((th * tq, 1), jnp.float32),     # running denom
            pltpu.VMEM((th * tq, C), jnp.float32),     # latent context accumulator
        ],
        compiler_params=pltpu.CompilerParams(
            dimension_semantics=("parallel", "parallel", "parallel", "arbitrary"),
            vmem_limit_bytes=_VMEM_LIMIT),
    )(q_nope, q_pe, kvn, k_pe, wk_scaled, wv)


# ----------------------------- plain-JAX glue ---------------------------------------

def apply_rotary_emb(x, cos, sin):
    # DeepSeek-V3 rotary: adjacent element pairs treated as complex numbers.
    # x: (B, S, H, D), cos/sin: (S, D//2)
    xr = x[..., 0::2]
    xi = x[..., 1::2]
    c = cos[None, :, None, :]
    s = sin[None, :, None, :]
    yr = xr * c - xi * s
    yi = xr * s + xi * c
    return jnp.stack([yr, yi], axis=-1).reshape(x.shape).astype(x.dtype)


def prepare_params(params, cfg):
    """One-time parameter prep: bf16 weight casts, wkv_b split into the absorbed
    per-head q/value weights, softmax_scale folded into the q-absorption weight."""
    H, Dn, Dv, C = (cfg["n_heads"], cfg["qk_nope_head_dim"],
                    cfg["v_head_dim"], cfg["kv_lora_rank"])
    wkv_b = params["wkv_b"].reshape(H, Dn + Dv, C).astype(jnp.float32)
    return {
        "wq_a": params["wq_a"].astype(jnp.bfloat16),
        "wq_b": params["wq_b"].astype(jnp.bfloat16),
        "wkv_a": params["wkv_a"].astype(jnp.bfloat16),
        "wo": params["wo"].astype(jnp.bfloat16),
        "q_norm": params["q_norm"].astype(jnp.float32),
        "kv_norm": params["kv_norm"].astype(jnp.float32),
        "wk_scaled": (wkv_b[:, :Dn, :] * cfg["softmax_scale"]).astype(jnp.bfloat16),
        "wv": wkv_b[:, Dn:, :].astype(jnp.bfloat16),
    }


def flatquant_mla_forward(fq_params, x, start_pos, cos, sin, mask, cfg):
    # `mask` (causal triu(-inf)) is reproduced in-kernel from iota; argument kept
    # for interface parity with the PyTorch module and otherwise unused.
    assert start_pos == 0, "only the prefill path is implemented"
    del mask
    B, S, dim = x.shape
    H = cfg["n_heads"]
    Dn, Dr, Dv = cfg["qk_nope_head_dim"], cfg["qk_rope_head_dim"], cfg["v_head_dim"]
    C = cfg["kv_lora_rank"]

    xf = x.reshape(B * S, dim).astype(jnp.bfloat16)

    # _trans_forward_qkv: qkv_trans / wqb_trans are None (16-bit config),
    # FlatQuantizedLinear quantizers are identity -> plain linears on the MXU.
    q = pallas_linear(xf, fq_params["wq_a"])                           # (B*S, R) bf16
    q = pallas_rms_linear(q, fq_params["q_norm"], fq_params["wq_b"])   # q_norm fused in
    kv_a = pallas_linear(xf, fq_params["wkv_a"])                       # (B*S, C+Dr) bf16

    q = q.reshape(B, S, H, Dn + Dr)
    q_nope = jnp.transpose(q[..., :Dn], (0, 2, 1, 3))                  # (B, H, S, Dn)
    q_pe = apply_rotary_emb(q[..., Dn:].astype(jnp.float32), cos, sin)
    q_pe = (q_pe * cfg["softmax_scale"]).astype(jnp.bfloat16)          # scale folded here
    q_pe = jnp.transpose(q_pe, (0, 2, 1, 3))                           # (B, H, S, Dr)

    kv_a = kv_a.reshape(B, S, C + Dr)
    k_pe = apply_rotary_emb(kv_a[..., C:].astype(jnp.float32)[:, :, None, :],
                            cos, sin)[:, :, 0, :].astype(jnp.bfloat16)  # (B, S, Dr)
    # kv RMSNorm once (bf16 out) — not re-done per attention block
    kvn = pallas_rmsnorm(kv_a[..., :C].reshape(B * S, C),
                         fq_params["kv_norm"]).reshape(B, S, C)

    # attention with fused q-absorption, in-kernel causal mask, online softmax,
    # fused value absorption -> (B, H, S, Dv) bf16
    out_h = pallas_mla_attention(q_nope, q_pe, kvn, k_pe,
                                 fq_params["wk_scaled"], fq_params["wv"])

    attn = jnp.transpose(out_h, (0, 2, 1, 3)).reshape(B * S, H * Dv)

    # wo: row-parallel, world_size == 1 -> all_reduce is a no-op, bias None.
    out = pallas_linear(attn, fq_params["wo"], out_dtype=x.dtype)
    return out.reshape(B, S, dim)


# ----------------------------- pure-JAX reference -----------------------------------

def _rmsnorm_ref(x, w, eps=1e-6):
    var = jnp.mean(x.astype(jnp.float32) ** 2, axis=-1, keepdims=True)
    return x * lax.rsqrt(var + eps) * w


def reference_forward(params, x, cos, sin, mask, cfg):
    B, S, dim = x.shape
    H = cfg["n_heads"]
    Dn, Dr, Dv = cfg["qk_nope_head_dim"], cfg["qk_rope_head_dim"], cfg["v_head_dim"]
    C = cfg["kv_lora_rank"]

    q = x @ params["wq_a"].T
    q = _rmsnorm_ref(q, params["q_norm"])
    q = q @ params["wq_b"].T
    kv_a = x @ params["wkv_a"].T

    q = q.reshape(B, S, H, Dn + Dr)
    q_nope, q_pe = q[..., :Dn], q[..., Dn:]
    q_pe = apply_rotary_emb(q_pe, cos, sin)

    kv, k_pe = kv_a[..., :C], kv_a[..., C:]
    k_pe = apply_rotary_emb(k_pe[:, :, None, :], cos, sin)[:, :, 0, :]

    wkv_b = params["wkv_b"].reshape(H, Dn + Dv, C)
    q_nope = jnp.einsum("bshd,hdc->bshc", q_nope, wkv_b[:, :Dn, :])
    kv = _rmsnorm_ref(kv, params["kv_norm"])

    scores = (jnp.einsum("bshc,btc->bsht", q_nope, kv) +
              jnp.einsum("bshr,btr->bsht", q_pe, k_pe)) * cfg["softmax_scale"]
    scores = scores + mask[None, :, None, :]
    scores = jax.nn.softmax(scores.astype(jnp.float32), axis=-1)

    o = jnp.einsum("bsht,btc->bshc", scores, kv)
    o = jnp.einsum("bshc,hdc->bshd", o, wkv_b[:, -Dv:, :])
    return (o.reshape(B, S, H * Dv) @ params["wo"].T).reshape(B, S, dim)


# ----------------------------- setup & main ------------------------------------------

def init_params(key, cfg):
    dim, H = cfg["dim"], cfg["n_heads"]
    Dn, Dr, Dv = cfg["qk_nope_head_dim"], cfg["qk_rope_head_dim"], cfg["v_head_dim"]
    C, R = cfg["kv_lora_rank"], cfg["q_lora_rank"]
    ks = jax.random.split(key, 7)

    def w(k, shape):
        return (jax.random.normal(k, shape, jnp.float32) /
                jnp.sqrt(float(shape[-1]))).astype(jnp.float32)

    return {
        "wq_a": w(ks[0], (R, dim)),
        "q_norm": 1.0 + 0.1 * jax.random.normal(ks[1], (R,), jnp.float32),
        "wq_b": w(ks[2], (H * (Dn + Dr), R)),
        "wkv_a": w(ks[3], (C + Dr, dim)),
        "kv_norm": 1.0 + 0.1 * jax.random.normal(ks[4], (C,), jnp.float32),
        "wkv_b": w(ks[5], (H * (Dn + Dv), C)),
        "wo": w(ks[6], (dim, H * Dv)),
    }


if __name__ == "__main__":
    cfg = dict(
        dim=64, n_heads=2, q_lora_rank=32, kv_lora_rank=32,
        qk_nope_head_dim=16, qk_rope_head_dim=8, v_head_dim=16,
    )
    cfg["softmax_scale"] = (cfg["qk_nope_head_dim"] + cfg["qk_rope_head_dim"]) ** -0.5

    key = jax.random.PRNGKey(0)
    kp, kx = jax.random.split(key)
    params = init_params(kp, cfg)
    fq_params = prepare_params(params, cfg)

    B, S = 2, 8
    start_pos = 0
    x = jax.random.normal(kx, (B, S, cfg["dim"]), jnp.float32)

    # freqs_cis (precompute_freqs_cis equivalent) as cos/sin, positions 0..S-1
    Dr = cfg["qk_rope_head_dim"]
    inv_freq = 1.0 / (10000.0 ** (jnp.arange(0, Dr, 2, dtype=jnp.float32) / Dr))
    ang = jnp.arange(S, dtype=jnp.float32)[:, None] * inv_freq[None, :]     # (S, Dr//2)
    cos, sin = jnp.cos(ang), jnp.sin(ang)

    # causal mask: torch.full((S, S), -inf).triu_(1)  (used by the reference only;
    # the Pallas attention kernel regenerates it from iota)
    ii = jnp.arange(S)
    mask = jnp.where(ii[None, :] <= ii[:, None], 0.0, -jnp.inf).astype(jnp.float32)

    out = flatquant_mla_forward(fq_params, x, start_pos, cos, sin, mask, cfg)
    out = jax.block_until_ready(out)

    ref = reference_forward(params, x, cos, sin, mask, cfg)
    assert out.shape == (B, S, cfg["dim"])
    # bf16 MXU operands / bf16 inter-kernel activations vs. pure-f32 reference.
    assert bool(jnp.allclose(out, ref, rtol=5e-2, atol=5e-2)), "mismatch vs reference"
    print("KERNEL_OK")
</pallas_src>

<mosaic_0001>
module attributes {stable_mosaic.version = 11 : i64} {
  func.func @_matmul_kernel(%arg0: i32, %arg1: i32, %arg2: i32, %arg3: memref<16x64xbf16, #tpu.memory_space<vmem>>, %arg4: memref<32x64xbf16, #tpu.memory_space<vmem>>, %arg5: memref<16x32xbf16, #tpu.memory_space<vmem>>, %arg6: memref<16x32xf32, #tpu.memory_space<vmem>>) attributes {dimension_semantics = [#tpu.dimension_semantics<parallel>, #tpu.dimension_semantics<parallel>, #tpu.dimension_semantics<arbitrary>], iteration_bounds = array<i64: 1, 1, 1>, scalar_prefetch = 0 : i64, scratch_operands = 1 : i64, tpu.core_type = #tpu.core_type<tc>, window_params = [{transform_indices = @transform_0, window_bounds = array<i64: 16, 64>}, {transform_indices = @transform_1, window_bounds = array<i64: 32, 64>}, {transform_indices = @transform_2, window_bounds = array<i64: 16, 32>}]} {
    %c0_i32 = arith.constant 0 : i32
    %0 = arith.cmpi eq, %arg2, %c0_i32 : i32
    %1 = arith.extui %0 : i1 to i32
    %c0_i32_0 = arith.constant 0 : i32
    %2 = arith.cmpi ne, %1, %c0_i32_0 : i32
    scf.if %2 {
      %cst_10 = arith.constant 0.000000e+00 : f32
      %12 = vector.broadcast %cst_10 : f32 to vector<16x32xf32>
      %c0_11 = arith.constant 0 : index
      %c0_12 = arith.constant 0 : index
      %13 = vector.load %arg6[%c0_11, %c0_12] : memref<16x32xf32, #tpu.memory_space<vmem>>, vector<16x32xf32>
      tpu.vector_store %arg6[%c0_11, %c0_12], %12 {strides = array<i32>} : memref<16x32xf32, #tpu.memory_space<vmem>>, vector<16x32xf32>,
    } else {
    }
    %c0 = arith.constant 0 : index
    %c0_1 = arith.constant 0 : index
    %3 = vector.load %arg6[%c0, %c0_1] : memref<16x32xf32, #tpu.memory_space<vmem>>, vector<16x32xf32>
    %c0_2 = arith.constant 0 : index
    %c0_3 = arith.constant 0 : index
    %4 = vector.load %arg3[%c0_2, %c0_3] : memref<16x64xbf16, #tpu.memory_space<vmem>>, vector<16x64xbf16>
    %c0_4 = arith.constant 0 : index
    %c0_5 = arith.constant 0 : index
    %5 = vector.load %arg4[%c0_4, %c0_5] : memref<32x64xbf16, #tpu.memory_space<vmem>>, vector<32x64xbf16>
    %cst = arith.constant dense<0.000000e+00> : vector<16x32xf32>
    %6 = tpu.matmul %4, %5, %cst {dimension_numbers = #tpu.dot_dimension_numbers<[1], [1], [0], [0], [0, 0, 1, 0], [], []>} : vector<16x64xbf16>, vector<32x64xbf16>, vector<16x32xf32> -> vector<16x32xf32>
    %7 = arith.addf %3, %6 : vector<16x32xf32>
    %c0_6 = arith.constant 0 : index
    %c0_7 = arith.constant 0 : index
    %8 = vector.load %arg6[%c0_6, %c0_7] : memref<16x32xf32, #tpu.memory_space<vmem>>, vector<16x32xf32>
    tpu.vector_store %arg6[%c0_6, %c0_7], %7 {strides = array<i32>} : memref<16x32xf32, #tpu.memory_space<vmem>>, vector<16x32xf32>,
    %c0_i32_8 = arith.constant 0 : i32
    %9 = arith.cmpi eq, %arg2, %c0_i32_8 : i32
    %10 = arith.extui %9 : i1 to i32
    %c0_i32_9 = arith.constant 0 : i32
    %11 = arith.cmpi ne, %10, %c0_i32_9 : i32
    scf.if %11 {
      %c0_10 = arith.constant 0 : index
      %c0_11 = arith.constant 0 : index
      %12 = vector.load %arg6[%c0_10, %c0_11] : memref<16x32xf32, #tpu.memory_space<vmem>>, vector<16x32xf32>
      %13 = arith.truncf %12 : vector<16x32xf32> to vector<16x32xbf16>
      %c0_12 = arith.constant 0 : index
      %c0_13 = arith.constant 0 : index
      %14 = vector.load %arg5[%c0_12, %c0_13] : memref<16x32xbf16, #tpu.memory_space<vmem>>, vector<16x32xbf16>
      tpu.vector_store %arg5[%c0_12, %c0_13], %13 {strides = array<i32>} : memref<16x32xbf16, #tpu.memory_space<vmem>>, vector<16x32xbf16>,
    } else {
    }
    return
  }
  func.func @transform_0(%arg0: i32, %arg1: i32, %arg2: i32) -> (i32, i32) {
    %c0_i32 = arith.constant 0 : i32
    return %arg0, %arg2 : i32, i32
  }
  func.func @transform_1(%arg0: i32, %arg1: i32, %arg2: i32) -> (i32, i32) {
    %c0_i32 = arith.constant 0 : i32
    return %arg1, %arg2 : i32, i32
  }
  func.func @transform_2(%arg0: i32, %arg1: i32, %arg2: i32) -> (i32, i32) {
    %c0_i32 = arith.constant 0 : i32
    return %arg0, %arg1 : i32, i32
  }
}

</mosaic_0001>

<bundles_post_ra>
// kernel: tpu_custom_call.1
= control target key start
LH: loop header
LB: loop body
LE: loop exit
PB: predicated region body
PF: predicated region fallthrough
CT: control target
= control target key end

     0   :  { %7 = vsyncpa [#allocation4], 0  ;;  %s300_s0 = inlined_call_operand.hbm [shape: bf16[16,64], index: 0, kind: input, shape index: {}]   ;;  %s301_s1 = inlined_call_operand.hbm [shape: bf16[32,64], index: 1, kind: input, shape index: {}]   ;;  %s302_s2 = inlined_call_operand.hbm [shape: bf16[16,32], index: 2, kind: output, shape index: {}]  }
   0x1   :  { %8 = vsyncpa [#allocation7], 0 }
   0x2   :  { %9 = vsyncpa [#allocation5], 0  ;;  %s256_s9 = smov [#allocation3]  }
   0x3   :  { %s15_s10 = sshll.u32 %s256_s9, 4  ;;  %s16_s10 = int_to_ptr.vmem [resolvable:$true] %s15_s10 }
   0x4   :  { %s198_s11 = scalar_lea.vmem %s16_s10, 128  ;;  %p203_p1 = scmp.lt.s32.totalorder %s16_s10, %s16_s10 }
   0x5   :  { %p199_p0 = scmp.ne.s32.totalorder %s16_s10, %s198_s11  ;;  %p204_p2 = scmp.lt.s32.totalorder %s198_s11, %s198_s11 }
   0x7   :  { %p205_p3 = por %p204_p2, %p203_p1 }
   0x9   :  { %p206_p4 = pnand %p205_p3, %p199_p0 }
   0xb   :  { %209 = shalt.err (!%p206_p4)
}
   0xc   :  { %s257_s12 = smov 64   ;;  %s258_s13 = smov 4  }
   0xd   :  { %21 = dma.hbm_to_vmem [thread:$0]  %s300_s0, 128, %s16_s10, [#allocation4], %s257_s12, %s257_s12, %s258_s13  }
   0xe   :  { %s259_s16 = smov [#allocation6]  }
   0xf   :  { %s27_s17 = sshll.u32 %s259_s16, 4  ;;  %s28_s17 = int_to_ptr.vmem [resolvable:$true] %s27_s17 }
  0x10   :  { %s218_s18 = scalar_lea.vmem %s28_s17, 256  ;;  %p223_p6 = scmp.lt.s32.totalorder %s28_s17, %s28_s17 }
  0x11   :  { %p219_p5 = scmp.ne.s32.totalorder %s28_s17, %s218_s18  ;;  %p224_p7 = scmp.lt.s32.totalorder %s218_s18, %s218_s18 }
  0x13   :  { %p225_p8 = por %p224_p7, %p223_p6 }
  0x15   :  { %p226_p9 = pnand %p225_p8, %p219_p5 }
  0x17   :  { %229 = shalt.err (!%p226_p9)
}
  0x18   :  { %33 = dma.hbm_to_vmem [thread:$0]  %s301_s1, 256, %s28_s17, [#allocation7], %s257_s12, %s257_s12, %s258_s13  }
  0x19   :  { %250 = dma.done.wait [#allocation4], 128  }
  0x1a   :  { %251 = vsyncadd [#allocation4], 4294967168 }
  0x1b   :  { %252 = dma.done.wait [#allocation7], 256  }
  0x1c   :  { %253 = vsyncadd [#allocation7], 4294967040  ;;  %vm45_vm0 = vcmask 261120   ;;  %v260_v0 = vmov 0.0   ;;  %vm261_vm1 = vmmov 0   ;;  %vm71_vm2 = vcmask 523264  }
  0x1d   :  { %46 = vst.msk [vmem:[#allocation2] sm:$0xff] %vm45_vm0, %v260_v0  ;;  %47 = vst.msk [vmem:[#allocation2 + $0x8] sm:$0xff] %vm45_vm0, %v260_v0  ;;  %172 = vmatprep.subr.bf16.mxu0 %v260_v0  ;;  %176 = vmatprep.mubr.msk.bf16.mxu0 %vm261_vm1, %v260_v0  ;;  %v187_v1 = vld [vmem:[#allocation6 + $0x8] sm:$0xff]   ;;  %v188_v3 = vld [vmem:[#allocation6] sm:$0xff]   ;;  %vm140_vm3 = vcmask 257024   ;;  %s262_s0 = smov [#allocation8]  }
  0x1e   :  { %v79_v2 = vsel %vm71_vm2, %v187_v1, 0  ;;  %v76_v4 = vsel %vm71_vm2, %v188_v3, 0  ;;  %v189_v5 = vld [vmem:[#allocation3] sm:$0xff]   ;;  %s148_s1 = sshll.u32 %s262_s0, 4  ;;  %s149_s1 = int_to_ptr.vmem [resolvable:$true] %s148_s1 }
  0x1f   :  { %173 = vmatpush3.bf16.xpose.msra.mxu0 %v79_v2  ;;  %s230_s21 = scalar_lea.vmem %s149_s1, 128  ;;  %p235_p11 = scmp.lt.s32.totalorder %s149_s1, %s149_s1 }
  0x20   :  { %174 = vmatprep.subr.bf16.mxu0 %v260_v0  ;;  %p231_p10 = scmp.ne.s32.totalorder %s149_s1, %s230_s21  ;;  %p236_p12 = scmp.lt.s32.totalorder %s230_s21, %s230_s21 }
  0x22   :  { %p237_p13 = por %p236_p12, %p235_p11 }
  0x24   :  { %v48_v6 = vld [vmem:[#allocation2] sm:$0xff]  ;;  %v49_v10 = vld [vmem:[#allocation2 + $0x8] sm:$0xff]  ;;  %p238_p0 = pnand %p237_p13, %p231_p10 }
  0x27   :  { %175 = vmatpush3.bf16.xpose.msra.mxu0 %v76_v4 }
  0x2e   :  { %177 = vmatmul.mubr.msk.bf16.vlgmr.msra.gmra.mxu0 %vm71_vm2, %v189_v5 }
  0xee   :  { %v115_v7 = vpop.f32.mrf.mxu0 }
  0xef   :  { %v122_v8 = vadd.f32 %v115_v7, %v48_v6 }
  0xf0   :  { %v178_v9 = vpop.f32.mrf.mxu0 }
  0xf1   :  { %125 = vst.msk [vmem:[#allocation2] sm:$0xff] %vm45_vm0, %v122_v8 }
  0xf2   :  { %v118_v11 = vpop.f32.mrf.mxu0 }
  0xf3   :  { %v123_v12 = vadd.f32 %v118_v11, %v49_v10 }
  0xf4   :  { %v179_v13 = vpop.f32.mrf.mxu0 }
  0xf5   :  { %126 = vst.msk [vmem:[#allocation2 + $0x8] sm:$0xff] %vm45_vm0, %v123_v12 }
  0xf8   :  { %v130_v14 = vld [vmem:[#allocation2] sm:$0xff] }
  0xf9   :  { %v167_v15 = vpack.c.bf16 %v130_v14, %v130_v14 }
  0xfb   :  { %141 = vst.msk [vmem:[#allocation8] sm:$0xf] %vm140_vm3, %v167_v15 }
  0xfc   :  { %v131_v16 = vld [vmem:[#allocation2 + $0x8] sm:$0xff] }
  0xfd   :  { %v168_v17 = vpack.c.bf16 %v131_v16, %v131_v16 }
  0xff   :  { %142 = vst.msk [vmem:[#allocation8 + $0x4] sm:$0xf] %vm140_vm3, %v168_v17 }
 0x100   :  { %241 = shalt.err (!%p238_p0)
}
 0x101   :  { %154 = dma.vmem_to_hbm [thread:$0]  %s149_s1, 128, %s302_s2, [#allocation5], %s257_s12, %s257_s12, %s258_s13  }
 0x102   :  { %254 = dma.done.wait [#allocation5], 128  }
 0x103   :  { %255 = vsyncadd [#allocation5], 4294967168 }
 0x104   :  { %158 = vsyncpa [#allocation4], 1 }
 0x105   :  { %159 = vsyncpa [#allocation7], 1 }
 0x106   :  { %160 = vsyncpa [#allocation5], 1 }

</bundles_post_ra>
